<compile_context>
chip_gen: v7x
topology: tpu7x:2x2x1
jax: 0.10.0
libtpu: 0.0.40
codegen_flags: <defaults>
</compile_context>

<pallas_src>
import jax
import jax.numpy as jnp
from jax.experimental import pallas as pl
from jax.experimental.pallas import tpu as pltpu


# ---------------------------------------------------------------------------
# Stage 1: QKV projection kernel (x @ Wq*scale, x @ Wk, x @ Wv), bf16 outputs.
# ---------------------------------------------------------------------------
def _qkv_proj_kernel(x_ref, wq_ref, wk_ref, wv_ref, q_ref, k_ref, v_ref):
    x = x_ref[...]                                            # (tp, C) bf16
    q_ref[...] = jnp.dot(x, wq_ref[...],
                         preferred_element_type=jnp.float32).astype(q_ref.dtype)
    k_ref[...] = jnp.dot(x, wk_ref[...],
                         preferred_element_type=jnp.float32).astype(k_ref.dtype)
    v_ref[...] = jnp.dot(x, wv_ref[...],
                         preferred_element_type=jnp.float32).astype(v_ref.dtype)


# ---------------------------------------------------------------------------
# Stage 2: flash attention over a flattened lower-triangular block schedule.
# ---------------------------------------------------------------------------
def _head_flash_kernel(qs_ref, ks_ref, q_ref, k_ref, v_ref, o_ref,
                       m_sc, l_sc, acc_sc):
    # qs_ref/ks_ref: (n_steps,) int32 SMEM   schedule of (query-block, kv-block)
    # q_ref : (tq, H) bf16   (softmax scale already folded into Wq)
    # k_ref : (tk, H) bf16
    # v_ref : (tk, H) bf16
    # o_ref : (tq, H) f32
    # m_sc, l_sc: (tq, 1) f32   running max / sum
    # acc_sc    : (tq, H) f32   running weighted-value accumulator
    s_idx = pl.program_id(1)
    qi = qs_ref[s_idx]
    ki = ks_ref[s_idx]

    tq, H = q_ref.shape
    tk = k_ref.shape[0]

    q_start = qi * tq
    k_start = ki * tk
    last_ki = (q_start + tq - 1) // tk      # last kv block needed for this q tile

    @pl.when(ki == 0)
    def _init():
        m_sc[...] = jnp.full_like(m_sc, -jnp.inf)
        l_sc[...] = jnp.zeros_like(l_sc)
        acc_sc[...] = jnp.zeros_like(acc_sc)

    # Scores: contract last dims of q and k directly (no k.T materialized).
    s = jax.lax.dot_general(
        q_ref[...], k_ref[...],
        dimension_numbers=(((1,), (1,)), ((), ())),
        preferred_element_type=jnp.float32)                   # (tq, tk) f32

    def _online_softmax_update(scores):
        m_prev = m_sc[...]
        m_new = jnp.maximum(m_prev, jnp.max(scores, axis=-1, keepdims=True))
        alpha = jnp.exp(m_prev - m_new)
        p = jnp.exp(scores - m_new)
        l_sc[...] = alpha * l_sc[...] + jnp.sum(p, axis=-1, keepdims=True)
        acc_sc[...] = alpha * acc_sc[...] + jnp.dot(
            p.astype(jnp.bfloat16), v_ref[...],
            preferred_element_type=jnp.float32)
        m_sc[...] = m_new

    # Only blocks straddling the diagonal pay for the mask; strictly-lower
    # blocks (k_start + tk - 1 <= q_start) take the unmasked fast path.
    needs_mask = k_start + tk - 1 > q_start

    @pl.when(needs_mask)
    def _masked():
        row = q_start + jax.lax.broadcasted_iota(jnp.int32, (tq, tk), 0)
        col = k_start + jax.lax.broadcasted_iota(jnp.int32, (tq, tk), 1)
        _online_softmax_update(jnp.where(col <= row, s, -jnp.inf))

    @pl.when(jnp.logical_not(needs_mask))
    def _unmasked():
        _online_softmax_update(s)

    @pl.when(ki == last_ki)
    def _finalize():
        o_ref[...] = (acc_sc[...] *
                      pl.reciprocal(l_sc[...], approx=True)).astype(o_ref.dtype)


def _pick_tile(T, pref):
    """Largest tile <= pref that divides T and is a multiple of 8 (or T itself)."""
    if T <= pref:
        return T
    for t in range(pref, 7, -8):
        if T % t == 0:
            return t
    return T


def head_forward(x, wk, wq, wv, *, tq=None, tk=None):
    """x: (B, T, C) float32; wk/wq/wv: (C, H) float32. Returns (B, T, H) float32."""
    B, T, C = x.shape
    H = wq.shape[1]

    if tq is None:
        tq = _pick_tile(T, 128)
    if tk is None:
        tk = _pick_tile(T, 128)
    assert T % tq == 0 and T % tk == 0, (T, tq, tk)
    nq = T // tq

    scale = C ** (-0.5)   # NB: scaled by n_embd (C), matching the PyTorch module.

    # bf16 MXU operands; softmax scale folded into Wq at trace time (free).
    x_bf = x.astype(jnp.bfloat16)
    wq_bf = (wq * scale).astype(jnp.bfloat16)
    wk_bf = wk.astype(jnp.bfloat16)
    wv_bf = wv.astype(jnp.bfloat16)

    # ---------------- Stage 1: Q/K/V projection (separate pallas_call) -------
    tp = _pick_tile(T, 256)
    qkv_shapes = tuple(jax.ShapeDtypeStruct((B, T, H), jnp.bfloat16) for _ in range(3))
    q, k, v = pl.pallas_call(
        _qkv_proj_kernel,
        out_shape=qkv_shapes,
        grid=(B, T // tp),
        in_specs=[
            pl.BlockSpec((pl.Squeezed(), tp, C), lambda b, i: (b, i, 0)),
            pl.BlockSpec((C, H), lambda b, i: (0, 0)),
            pl.BlockSpec((C, H), lambda b, i: (0, 0)),
            pl.BlockSpec((C, H), lambda b, i: (0, 0)),
        ],
        out_specs=tuple(
            pl.BlockSpec((pl.Squeezed(), tp, H), lambda b, i: (b, i, 0))
            for _ in range(3)),
        compiler_params=pltpu.CompilerParams(
            dimension_semantics=("parallel", "parallel")),
    )(x_bf, wq_bf, wk_bf, wv_bf)

    # -------- Stage 2: flash attention over lower-triangular block schedule --
    # Flattened (qi, ki) schedule: only blocks with k_start <= q_end are visited,
    # so no grid steps are wasted on the causal upper triangle.
    qi_list, ki_list = [], []
    for q_blk in range(nq):
        last_ki = (q_blk * tq + tq - 1) // tk
        for k_blk in range(last_ki + 1):
            qi_list.append(q_blk)
            ki_list.append(k_blk)
    n_steps = len(qi_list)
    qi_arr = jnp.asarray(qi_list, dtype=jnp.int32)
    ki_arr = jnp.asarray(ki_list, dtype=jnp.int32)

    return pl.pallas_call(
        _head_flash_kernel,
        out_shape=jax.ShapeDtypeStruct((B, T, H), x.dtype),
        grid_spec=pltpu.PrefetchScalarGridSpec(
            num_scalar_prefetch=2,
            grid=(B, n_steps),
            in_specs=[
                pl.BlockSpec((pl.Squeezed(), tq, H),
                             lambda b, s, qs, ks: (b, qs[s], 0)),
                pl.BlockSpec((pl.Squeezed(), tk, H),
                             lambda b, s, qs, ks: (b, ks[s], 0)),
                pl.BlockSpec((pl.Squeezed(), tk, H),
                             lambda b, s, qs, ks: (b, ks[s], 0)),
            ],
            out_specs=pl.BlockSpec((pl.Squeezed(), tq, H),
                                   lambda b, s, qs, ks: (b, qs[s], 0)),
            scratch_shapes=[
                pltpu.VMEM((tq, 1), jnp.float32),   # m_sc
                pltpu.VMEM((tq, 1), jnp.float32),   # l_sc
                pltpu.VMEM((tq, H), jnp.float32),   # acc_sc
            ],
        ),
        compiler_params=pltpu.CompilerParams(
            dimension_semantics=("parallel", "arbitrary")),
    )(qi_arr, ki_arr, q, k, v)


def head_reference(x, wk, wq, wv):
    """Pure-JAX f32 reference mirroring the PyTorch forward."""
    B, T, C = x.shape
    k = x @ wk
    q = x @ wq
    v = x @ wv
    wei = jnp.einsum("bth,bsh->bts", q, k) * (C ** -0.5)
    mask = jnp.tril(jnp.ones((T, T), dtype=bool))
    wei = jnp.where(mask, wei, -jnp.inf)
    wei = jax.nn.softmax(wei, axis=-1)
    return jnp.einsum("bts,bsh->bth", wei, v)


if __name__ == "__main__":
    # Shapes consistent with the module: n_embd=32, head_size=16.
    B, T, C, H = 2, 8, 32, 16

    key = jax.random.PRNGKey(0)
    kx, kk, kq, kv = jax.random.split(key, 4)
    x = jax.random.normal(kx, (B, T, C), dtype=jnp.float32)
    # nn.Linear(C, H, bias=False).weight has shape (H, C); we store transposed (C, H).
    wk = jax.random.normal(kk, (C, H), dtype=jnp.float32) * (C ** -0.5)
    wq = jax.random.normal(kq, (C, H), dtype=jnp.float32) * (C ** -0.5)
    wv = jax.random.normal(kv, (C, H), dtype=jnp.float32) * (C ** -0.5)

    # Test 1: small shape, single tile (init + mask + finalize in one step).
    out = head_forward(x, wk, wq, wv)
    out = jax.block_until_ready(out)
    ref = head_reference(x, wk, wq, wv)
    assert out.shape == (B, T, H), out.shape
    err = float(jnp.max(jnp.abs(out - ref)))
    assert err < 5e-2, err

    # Test 2: longer sequence exercising the multi-tile flash path, the flattened
    # lower-triangular schedule, and the unmasked fast path.
    T2 = 256
    x2 = jax.random.normal(jax.random.PRNGKey(1), (B, T2, C), dtype=jnp.float32)
    out2 = head_forward(x2, wk, wq, wv, tq=128, tk=128)
    out2 = jax.block_until_ready(out2)
    ref2 = head_reference(x2, wk, wq, wv)
    rel = float(jnp.linalg.norm(out2 - ref2) / jnp.linalg.norm(ref2))
    assert rel < 3e-2, rel

    print("KERNEL_OK")
</pallas_src>

<mosaic_0001>
module attributes {stable_mosaic.version = 11 : i64} {
  func.func @_qkv_proj_kernel(%arg0: i32, %arg1: i32, %arg2: memref<1x8x32xbf16, #tpu.memory_space<vmem>>, %arg3: memref<32x16xbf16, #tpu.memory_space<vmem>>, %arg4: memref<32x16xbf16, #tpu.memory_space<vmem>>, %arg5: memref<32x16xbf16, #tpu.memory_space<vmem>>, %arg6: memref<1x8x16xbf16, #tpu.memory_space<vmem>>, %arg7: memref<1x8x16xbf16, #tpu.memory_space<vmem>>, %arg8: memref<1x8x16xbf16, #tpu.memory_space<vmem>>) attributes {dimension_semantics = [#tpu.dimension_semantics<parallel>, #tpu.dimension_semantics<parallel>], iteration_bounds = array<i64: 2, 1>, scalar_prefetch = 0 : i64, scratch_operands = 0 : i64, tpu.core_type = #tpu.core_type<tc>, window_params = [{transform_indices = @transform_0, window_bounds = array<i64: 1, 8, 32>}, {pipeline_mode = #tpu.pipeline_mode<synchronous>, transform_indices = @transform_1, window_bounds = array<i64: 32, 16>}, {pipeline_mode = #tpu.pipeline_mode<synchronous>, transform_indices = @transform_2, window_bounds = array<i64: 32, 16>}, {pipeline_mode = #tpu.pipeline_mode<synchronous>, transform_indices = @transform_3, window_bounds = array<i64: 32, 16>}, {transform_indices = @transform_4, window_bounds = array<i64: 1, 8, 16>}, {transform_indices = @transform_5, window_bounds = array<i64: 1, 8, 16>}, {transform_indices = @transform_6, window_bounds = array<i64: 1, 8, 16>}]} {
    %c0 = arith.constant 0 : index
    %c0_0 = arith.constant 0 : index
    %c0_1 = arith.constant 0 : index
    %0 = vector.load %arg2[%c0, %c0_0, %c0_1] : memref<1x8x32xbf16, #tpu.memory_space<vmem>>, vector<1x8x32xbf16>
    %1 = vector.shape_cast %0 : vector<1x8x32xbf16> to vector<8x32xbf16>
    %c0_2 = arith.constant 0 : index
    %c0_3 = arith.constant 0 : index
    %2 = vector.load %arg3[%c0_2, %c0_3] : memref<32x16xbf16, #tpu.memory_space<vmem>>, vector<32x16xbf16>
    %cst = arith.constant dense<0.000000e+00> : vector<8x16xf32>
    %3 = tpu.matmul %1, %2, %cst {dimension_numbers = #tpu.dot_dimension_numbers<[1], [0], [0], [1], [0, 0, 1, 1], [], []>} : vector<8x32xbf16>, vector<32x16xbf16>, vector<8x16xf32> -> vector<8x16xf32>
    %4 = arith.truncf %3 : vector<8x16xf32> to vector<8x16xbf16>
    %c0_4 = arith.constant 0 : index
    %c0_5 = arith.constant 0 : index
    %c0_6 = arith.constant 0 : index
    %5 = vector.load %arg6[%c0_4, %c0_5, %c0_6] : memref<1x8x16xbf16, #tpu.memory_space<vmem>>, vector<1x8x16xbf16>
    %6 = vector.shape_cast %5 : vector<1x8x16xbf16> to vector<8x16xbf16>
    %7 = vector.shape_cast %4 : vector<8x16xbf16> to vector<1x8x16xbf16>
    tpu.vector_store %arg6[%c0_4, %c0_5, %c0_6], %7 {strides = array<i32>} : memref<1x8x16xbf16, #tpu.memory_space<vmem>>, vector<1x8x16xbf16>,
    %c0_7 = arith.constant 0 : index
    %c0_8 = arith.constant 0 : index
    %8 = vector.load %arg4[%c0_7, %c0_8] : memref<32x16xbf16, #tpu.memory_space<vmem>>, vector<32x16xbf16>
    %cst_9 = arith.constant dense<0.000000e+00> : vector<8x16xf32>
    %9 = tpu.matmul %1, %8, %cst_9 {dimension_numbers = #tpu.dot_dimension_numbers<[1], [0], [0], [1], [0, 0, 1, 1], [], []>} : vector<8x32xbf16>, vector<32x16xbf16>, vector<8x16xf32> -> vector<8x16xf32>
    %10 = arith.truncf %9 : vector<8x16xf32> to vector<8x16xbf16>
    %c0_10 = arith.constant 0 : index
    %c0_11 = arith.constant 0 : index
    %c0_12 = arith.constant 0 : index
    %11 = vector.load %arg7[%c0_10, %c0_11, %c0_12] : memref<1x8x16xbf16, #tpu.memory_space<vmem>>, vector<1x8x16xbf16>
    %12 = vector.shape_cast %11 : vector<1x8x16xbf16> to vector<8x16xbf16>
    %13 = vector.shape_cast %10 : vector<8x16xbf16> to vector<1x8x16xbf16>
    tpu.vector_store %arg7[%c0_10, %c0_11, %c0_12], %13 {strides = array<i32>} : memref<1x8x16xbf16, #tpu.memory_space<vmem>>, vector<1x8x16xbf16>,
    %c0_13 = arith.constant 0 : index
    %c0_14 = arith.constant 0 : index
    %14 = vector.load %arg5[%c0_13, %c0_14] : memref<32x16xbf16, #tpu.memory_space<vmem>>, vector<32x16xbf16>
    %cst_15 = arith.constant dense<0.000000e+00> : vector<8x16xf32>
    %15 = tpu.matmul %1, %14, %cst_15 {dimension_numbers = #tpu.dot_dimension_numbers<[1], [0], [0], [1], [0, 0, 1, 1], [], []>} : vector<8x32xbf16>, vector<32x16xbf16>, vector<8x16xf32> -> vector<8x16xf32>
    %16 = arith.truncf %15 : vector<8x16xf32> to vector<8x16xbf16>
    %c0_16 = arith.constant 0 : index
    %c0_17 = arith.constant 0 : index
    %c0_18 = arith.constant 0 : index
    %17 = vector.load %arg8[%c0_16, %c0_17, %c0_18] : memref<1x8x16xbf16, #tpu.memory_space<vmem>>, vector<1x8x16xbf16>
    %18 = vector.shape_cast %17 : vector<1x8x16xbf16> to vector<8x16xbf16>
    %19 = vector.shape_cast %16 : vector<8x16xbf16> to vector<1x8x16xbf16>
    tpu.vector_store %arg8[%c0_16, %c0_17, %c0_18], %19 {strides = array<i32>} : memref<1x8x16xbf16, #tpu.memory_space<vmem>>, vector<1x8x16xbf16>,
    return
  }
  func.func @transform_0(%arg0: i32, %arg1: i32) -> (i32, i32, i32) {
    %c0_i32 = arith.constant 0 : i32
    %c0_i32_0 = arith.constant 0 : i32
    return %arg0, %arg1, %c0_i32 : i32, i32, i32
  }
  func.func @transform_1(%arg0: i32, %arg1: i32) -> (i32, i32) {
    %c0_i32 = arith.constant 0 : i32
    %c0_i32_0 = arith.constant 0 : i32
    %c0_i32_1 = arith.constant 0 : i32
    return %c0_i32, %c0_i32_0 : i32, i32
  }
  func.func @transform_2(%arg0: i32, %arg1: i32) -> (i32, i32) {
    %c0_i32 = arith.constant 0 : i32
    %c0_i32_0 = arith.constant 0 : i32
    %c0_i32_1 = arith.constant 0 : i32
    return %c0_i32, %c0_i32_0 : i32, i32
  }
  func.func @transform_3(%arg0: i32, %arg1: i32) -> (i32, i32) {
    %c0_i32 = arith.constant 0 : i32
    %c0_i32_0 = arith.constant 0 : i32
    %c0_i32_1 = arith.constant 0 : i32
    return %c0_i32, %c0_i32_0 : i32, i32
  }
  func.func @transform_4(%arg0: i32, %arg1: i32) -> (i32, i32, i32) {
    %c0_i32 = arith.constant 0 : i32
    %c0_i32_0 = arith.constant 0 : i32
    return %arg0, %arg1, %c0_i32 : i32, i32, i32
  }
  func.func @transform_5(%arg0: i32, %arg1: i32) -> (i32, i32, i32) {
    %c0_i32 = arith.constant 0 : i32
    %c0_i32_0 = arith.constant 0 : i32
    return %arg0, %arg1, %c0_i32 : i32, i32, i32
  }
  func.func @transform_6(%arg0: i32, %arg1: i32) -> (i32, i32, i32) {
    %c0_i32 = arith.constant 0 : i32
    %c0_i32_0 = arith.constant 0 : i32
    return %arg0, %arg1, %c0_i32 : i32, i32, i32
  }
}

</mosaic_0001>

<bundles_post_ra>
// kernel: tpu_custom_call.1
= control target key start
LH: loop header
LB: loop body
LE: loop exit
PB: predicated region body
PF: predicated region fallthrough
CT: control target
= control target key end

     0   :  { %s1202_s0 = inlined_call_operand.vmem [shape: bf16[2,8,32], index: 0, kind: input, shape index: {}]   ;;  %s1203_s1 = inlined_call_operand.vmem [shape: bf16[32,16], index: 1, kind: input, shape index: {}]   ;;  %s1204_s2 = inlined_call_operand.vmem [shape: bf16[32,16], index: 2, kind: input, shape index: {}]   ;;  %s1205_s3 = inlined_call_operand.vmem [shape: bf16[32,16], index: 3, kind: input, shape index: {}]   ;;  %s1206_s4 = inlined_call_operand.hbm [shape: bf16[2,8,16], index: 4, kind: output, shape index: {0}]   ;;  %s1207_s5 = inlined_call_operand.hbm [shape: bf16[2,8,16], index: 5, kind: output, shape index: {1}]   ;;  %s1208_s6 = inlined_call_operand.hbm [shape: bf16[2,8,16], index: 6, kind: output, shape index: {2}]  }
   0x1   :  { %1211 = sst [smem:[#allocation9_spill]] %s1202_s0 }
   0x2   :  { %12 = vsyncpa [#allocation3], 0 }
   0x3   :  { %14 = vsyncpa [#allocation3 + $0x1], 0 }
   0x4   :  { %15 = vsyncpa [#allocation5], 0 }
   0x5   :  { %17 = vsyncpa [#allocation5 + $0x1], 0  ;;  %s974_s21 = smov 0   ;;  %s976_s22 = smov 0  }
   0x6   :  { %s978_s23 = smov 0   ;;  %s980_s24 = smov 0  }
   0x7   :  { %s982_s25 = smov 0   ;;  %s984_s26 = smov 0  }
   0x8 LB: > { %s662_s27 = sadd.s32 4294967295, %s932_s26   ;;  %s1209_s28 = sadd.s32 4294967294, %s932_s26   ;;  %s932_s26 = sphi %s984_s26, %s23_s26   ;;  %s928_s25 = sphi %s982_s25, %s1221_s25   ;;  %s924_s24 = sphi %s980_s24, %s1220_s24   ;;  %s920_s23 = sphi %s978_s23, %s1219_s23   ;;  %s916_s22 = sphi %s976_s22, %s1218_s22   ;;  %s912_s21 = sphi %s974_s21, %s1217_s21  }
   0x9   : > { %s35_s29 = sadd.s32 1, %s928_s25  ;;  %s135_s30 = sadd.s32 1, %s920_s23 }
   0xa   : > { %p37_p0 = scmp.ge.s32.totalorder %s35_s29, 2  ;;  %p145_p1 = scmp.ne.s32.totalorder %s920_s23, %s916_s22 }
   0xb   : > { %p146_p2 = scmp.eq.s32.totalorder %s662_s27, 1  ;;  %p151_p3 = scmp.ne.s32.totalorder %s916_s22, %s912_s21 }
   0xc   : > { %s1223_s29 = smov (%p37_p0, %s35_s29), 0  ;;  %p152_p5 = scmp.eq.s32.totalorder %s1209_s28, 1 }
   0xd   : > { %p1016_p4 = por %p146_p2, %p145_p1  ;;  %s130_s8 = ssub.s32 %s928_s25, %s1223_s29 }
   0xe   : > { %p666_p6 = scmp.ge.s32.totalorder %s932_s26, 1  ;;  %p133_p7 = scmp.eq.s32.totalorder %s130_s8, 0 }
   0xf   : > { %p1025_p8 = por %p152_p5, %p151_p3  ;;  %p245_p9 = scmp.lt.s32.totalorder %s932_s26, 3 }
  0x10   : > { %s1031_s10 = scalar_select %p133_p7, %s920_s23, %s135_s30  }
  0x11   : > { %p246_p10 = pnand %p666_p6, %p245_p9 }
  0x12   : > { %v788_v0 = vld [vmem:[%s1203_s1] sm:$0xff] (!%p246_p10)   ;;  %v934_v1 = vmov (!%p246_p10), 0.0   ;;  %v789_v2 = vld [vmem:[%s1203_s1 + $0x8] sm:$0xff] (!%p246_p10)   ;;  %vm935_vm0 = vmmov (!%p246_p10), 0   ;;  %p287_p11 = scmp.lt.s32.totalorder (!%p246_p10), %s924_s24, 1  ;;  %vm312_vm1 = vcmask (!%p246_p10), 261120  }
  0x13   : > { %249 = sbr.rel (%p246_p10) target bundleno = 306 (0x132), region = 36  ;;  %697 = vmatprep.subr.bf16.mxu0 (!%p246_p10), %v934_v1  ;;  %705 = vmatprep.subr.bf16.mxu1 (!%p246_p10), %v934_v1  ;;  %v790_v3 = vld [vmem:[%s1204_s2] sm:$0xff] (!%p246_p10)   ;;  %v792_v4 = vld [vmem:[%s1204_s2 + $0x8] sm:$0xff] (!%p246_p10)   ;;  %s1214_s0 = sld [smem:[#allocation9_spill]] (!%p246_p10)  ;;  %vm357_vm2 = vcmask (!%p246_p10), 125952  }
  0x14   : > { %698 = vmatpush3.bf16.msra.mxu0 (!%p246_p10), %v788_v0  ;;  %701 = vmatprep.mubr.msk.bf16.mxu0 (!%p246_p10), %vm935_vm0, %v934_v1  ;;  %v791_v5 = vld [vmem:[%s1205_s3] sm:$0xff] (!%p246_p10)   ;;  %v793_v7 = vld [vmem:[%s1205_s3 + $0x8] sm:$0xff] (!%p246_p10)   ;;  %s270_s16 = sand.u32 (!%p246_p10), 1, %s916_s22   ;;  %s1063_s18 = sshll.u32 (!%p246_p10), %s924_s24, 6 }
  0x15   : > { %699 = vmatprep.subr.bf16.mxu0 (!%p246_p10), %v934_v1  ;;  %709 = vmatprep.mubr.msk.bf16.mxu1 (!%p246_p10), %vm935_vm0, %v934_v1  ;;  %s1068_s30 = sand.u32 (!%p246_p10), 1, %s662_s27   ;;  %s1085_s15 = scalar_lea.hbm (!%p246_p10), %s1207_s5, %s1063_s18 }
  0x16   : > { %706 = vmatpush3.bf16.msra.mxu1 (!%p246_p10), %v790_v3  ;;  %s476_s12 = scalar_lea.sflag (!%p246_p10), [#allocation3], %s270_s16  ;;  %s936_s28 = smov (!%p246_p10), [#allocation2]  }
  0x17   : > { %707 = vmatprep.subr.bf16.mxu1 (!%p246_p10), %v934_v1 }
  0x18   : > { %700 = vmatpush3.bf16.msra.mxu0 (!%p246_p10), %v789_v2 }
  0x19   : > { %713 = vmatprep.subr.bf16.mxu0 (!%p246_p10), %v934_v1 }
  0x1a   : > { %s288_s17 = scalar_select %p287_p11, %s924_s24, 1  ;;  %708 = vmatpush3.bf16.msra.mxu1 %v792_v4 }
  0x1b   : > { %s1077_s24 = scalar_lea.hbm %s1206_s4, %s1063_s18 }
  0x1c   : > { %s670_s20 = sshll.u32 %s288_s17, 2  ;;  %s1060_s17 = sshll.u32 %s270_s16, 2 }
  0x1d   : > { %s293_s13 = scalar_lea.vmem %s1214_s0, %s670_s20  ;;  %s272_s19 = scalar_lea.vmem [#allocation2], %s1060_s17 }
  0x1e   : > { %v295_v6 = vld [vmem:[%s293_s13] sm:$0xf]  ;;  %s500_s20 = sshll.u32 %s272_s19, 4  ;;  %s1210_s8 = scalar_lea.vmem [#allocation4], %s1060_s17  ;;  %s1079_s20 = int_to_ptr.vmem [resolvable:$true] %s500_s20 }
  0x1f   : > { %702 = vmatmul.mubr.msk.bf16.vlgmr.msra.gmra.mrb[0].mxu0 %vm312_vm1, %v295_v6  ;;  %710 = vmatmul.mubr.msk.bf16.vlgmr.msra.gmra.mrb[0].mxu1 %vm312_vm1, %v295_v6  ;;  %s514_s11 = sshll.u32 %s1210_s8, 4  ;;  %s794_s13 = scalar_lea.vmem %s1079_s20, 64  ;;  %s1087_s11 = int_to_ptr.vmem [resolvable:$true] %s514_s11 }
  0x20   : > { %714 = vmatpush3.bf16.msra.mxu0 %v791_v5  ;;  %717 = vmatprep.mubr.msk.bf16.mxu0 %vm935_vm0, %v934_v1  ;;  %p795_p12 = scmp.ne.s32.totalorder %s1079_s20, %s794_s13  ;;  %s798_s8 = sshll.u32 %s936_s28, 4  ;;  %s799_s8 = int_to_ptr.vmem [resolvable:$false] %s798_s8 }
  0x21   : > { %715 = vmatprep.subr.bf16.mxu0 %v934_v1  ;;  %s800_s0 = scalar_lea.vmem %s799_s8, 128  ;;  %p801_p1 = scmp.lt.s32.totalorder %s1079_s20, %s799_s8 }
  0x22   : > { %p796_p13 = pnand %p795_p12, %p1016_p4  ;;  %p802_p2 = scmp.lt.s32.totalorder %s800_s0, %s794_s13 }
  0x24   : > { %716 = vmatpush3.bf16.msra.mxu0 %v793_v7  ;;  %p797_p0 = pneg %p796_p13  ;;  %p803_p3 = por %p802_p2, %p801_p1 }
  0x26   : > { %p804_p5 = pnand %p803_p3, %p797_p0 }
  0x27   : > { %718 = vmatmul.mubr.msk.bf16.vlgmr.msra.gmra.mrb[4].mxu0 %vm312_vm1, %v295_v6 }
  0xf2   : > { %v350_v8 = vpop.f32.mrb[0].mxu0  ;;  %v409_v12 = vpop.f32.mrb[0].mxu1 }
  0xf3   : > { %v356_v9 = vpack.c.bf16 %v350_v8, %v350_v8  ;;  %v703_v10 = vpop.f32.mrb[1].mxu0  ;;  %v415_v14 = vpack.c.bf16 %v409_v12, %v409_v12  ;;  %v711_v15 = vpop.f32.mrb[1].mxu1 }
  0xf4   : > { %v353_v11 = vpop.f32.mrb[2].mxu0  ;;  %v412_v16 = vpop.f32.mrb[2].mxu1 }
  0xf5   : > { %v704_v13 = vpop.f32.mrb[3].mxu0  ;;  %358 = vst.msk [vmem:[%s272_s19] sm:$0xf] %vm357_vm2, %v356_v9 }
  0xf6   : > { %807 = shalt.err (!%p804_p5)
}
  0xf7   : > { %s808_s16 = scalar_lea.hbm %s1077_s24, 64  ;;  %s812_s28 = scalar_lea.hbm %s1206_s4, 128 }
  0xf8   : > { %p809_p6 = scmp.ne.s32.totalorder %s1077_s24, %s808_s16  ;;  %p813_p10 = scmp.lt.u32.totalorder %s1077_s24, %s1206_s4 }
  0xf9   : > { %p814_p11 = scmp.lt.u32.totalorder %s812_s28, %s808_s16  ;;  %p816_p13 = scmp.lt.u32.totalorder %s808_s16, %s1077_s24 }
  0xfa   : > { %p810_p7 = pnand %p809_p6, %p1016_p4 }
  0xfb   : > { %p815_p12 = por %p814_p11, %p813_p10 }
  0xfc   : > { %p811_p9 = pneg %p810_p7 }
  0xfd   : > { %p817_p0 = por %p816_p13, %p815_p12 }
  0xff   : > { %p818_p1 = pnand %p817_p0, %p811_p9 }
 0x101   : > { %821 = shalt.err (!%p818_p1)
}
 0x102   : > { %721 = dma.vmem_to_hbm [thread:$0]  (%p1016_p4), %s1079_s20, 64, %s1077_s24, %s476_s12   ;;  %v712_v17 = vpop.f32.mrb[3].mxu1 }
 0x103   : > { %s1215_s0 = scalar_lea.vmem [#allocation4], %s1060_s17  ;;  %s286_s13 = scalar_lea.vmem [#allocation6], %s1060_s17 }
 0x104   : > { %416 = vst.msk [vmem:[%s1215_s0] sm:$0xf] %vm357_vm2, %v415_v14  ;;  %s1117_s16 = sshll.u32 %s286_s13, 4  ;;  %s481_s19 = scalar_lea.sflag [#allocation5], %s1068_s30  ;;  %s1150_s16 = int_to_ptr.vmem [resolvable:$true] %s1117_s16 }
 0x105   : > { %s822_s27 = scalar_lea.vmem %s1087_s11, 64  ;;  %s937_s28 = smov [#allocation4]  }
 0x106   : > { %p823_p2 = scmp.ne.s32.totalorder %s1087_s11, %s822_s27  ;;  %s826_s14 = sshll.u32 %s937_s28, 4  ;;  %s827_s14 = int_to_ptr.vmem [resolvable:$false] %s826_s14 }
 0x107   : > { %s828_s8 = scalar_lea.vmem %s827_s14, 128  ;;  %p829_p6 = scmp.lt.s32.totalorder %s1087_s11, %s827_s14 }
 0x108   : > { %p824_p3 = pnand %p823_p2, %p1016_p4  ;;  %p830_p7 = scmp.lt.s32.totalorder %s828_s8, %s822_s27 }
 0x10a   : > { %p825_p5 = pneg %p824_p3  ;;  %p831_p9 = por %p830_p7, %p829_p6 }
 0x10c   : > { %p832_p10 = pnand %p831_p9, %p825_p5 }
 0x10e   : > { %835 = shalt.err (!%p832_p10)
}
 0x10f   : > { %s836_s20 = scalar_lea.hbm %s1085_s15, 64  ;;  %s840_s0 = scalar_lea.hbm %s1207_s5, 128 }
 0x110   : > { %p837_p11 = scmp.ne.s32.totalorder %s1085_s15, %s836_s20  ;;  %p841_p0 = scmp.lt.u32.totalorder %s1085_s15, %s1207_s5 }
 0x111   : > { %p842_p1 = scmp.lt.u32.totalorder %s840_s0, %s836_s20  ;;  %p844_p3 = scmp.lt.u32.totalorder %s836_s20, %s1085_s15 }
 0x112   : > { %p838_p12 = pnand %p837_p11, %p1016_p4 }
 0x113   : > { %p843_p2 = por %p842_p1, %p841_p0 }
 0x114   : > { %p839_p13 = pneg %p838_p12 }
 0x115   : > { %p845_p5 = por %p844_p3, %p843_p2 }
 0x117   : > { %p846_p6 = pnand %p845_p5, %p839_p13 }
 0x119   : > { %849 = shalt.err (!%p846_p6)
}
 0x11a   : > { %722 = dma.vmem_to_hbm [thread:$0]  (%p1016_p4), %s1087_s11, 64, %s1085_s15, %s481_s19   ;;  %v467_v18 = vpop.f32.mrb[4].mxu0 }
 0x11b   : > { %v473_v19 = vpack.c.bf16 %v467_v18, %v467_v18  ;;  %v719_v20 = vpop.f32.mrb[5].mxu0  ;;  %s1147_s20 = scalar_lea.hbm %s1208_s6, %s1063_s18  ;;  %s850_s24 = scalar_lea.vmem %s1150_s16, 64 }
 0x11c   : > { %v470_v21 = vpop.f32.mrb[6].mxu0  ;;  %p851_p7 = scmp.ne.s32.totalorder %s1150_s16, %s850_s24  ;;  %s938_s11 = smov [#allocation6]  }
 0x11d   : > { %474 = vst.msk [vmem:[%s286_s13] sm:$0xf] %vm357_vm2, %v473_v19  ;;  %v720_v22 = vpop.f32.mrb[7].mxu0  ;;  %s854_s15 = sshll.u32 %s938_s11, 4  ;;  %s855_s15 = int_to_ptr.vmem [resolvable:$false] %s854_s15 }
 0x11e   : > { %p852_p9 = pnand %p851_p7, %p1016_p4  ;;  %s856_s18 = scalar_lea.vmem %s855_s15, 128 }
 0x11f   : > { %p857_p11 = scmp.lt.s32.totalorder %s1150_s16, %s855_s15  ;;  %p858_p12 = scmp.lt.s32.totalorder %s856_s18, %s850_s24 }
 0x120   : > { %p853_p10 = pneg %p852_p9 }
 0x121   : > { %p859_p13 = por %p858_p12, %p857_p11 }
 0x123   : > { %p860_p0 = pnand %p859_p13, %p853_p10 }
 0x125   : > { %863 = shalt.err (!%p860_p0)
}
 0x126   : > { %s864_s17 = scalar_lea.hbm %s1147_s20, 64  ;;  %s868_s0 = scalar_lea.hbm %s1208_s6, 128 }
 0x127   : > { %p865_p1 = scmp.ne.s32.totalorder %s1147_s20, %s864_s17  ;;  %p869_p5 = scmp.lt.u32.totalorder %s1147_s20, %s1208_s6 }
 0x128   : > { %p870_p6 = scmp.lt.u32.totalorder %s868_s0, %s864_s17  ;;  %p872_p9 = scmp.lt.u32.totalorder %s864_s17, %s1147_s20 }
 0x129   : > { %p866_p2 = pnand %p865_p1, %p1016_p4 }
 0x12a   : > { %p871_p7 = por %p870_p6, %p869_p5 }
 0x12b   : > { %p867_p3 = pneg %p866_p2 }
 0x12c   : > { %p873_p10 = por %p872_p9, %p871_p7 }
 0x12e   : > { %p874_p11 = pnand %p873_p10, %p867_p3 }
 0x130   : > { %877 = shalt.err (!%p874_p11)
}
 0x131   : > { %723 = dma.vmem_to_hbm [thread:$0]  (%p1016_p4), %s1150_s16, 64, %s1147_s20, %s481_s19  }
 0x132 PF: > { %p737_p12 = scmp.ge.s32.totalorder %s932_s26, 2  ;;  %s540_s27 = sand.u32 1, %s912_s21  }
 0x133   : > { %s541_s8 = scalar_lea.sflag [#allocation3], %s540_s27 }
 0x134   : > { %p728_p13 = pnand %p737_p12, %p1025_p8 }
 0x136   : > { %903 = dma.done.wait (!%p728_p13), %s541_s8, 64  }
 0x137   : > { %905 = vsyncadd (!%p728_p13), %s541_s8, 4294967232  ;;  %s1216_s24 = sadd.s32 4294967294, %s932_s26  }
 0x138   : > { %s549_s11 = sand.u32 1, %s1216_s24  }
 0x139   : > { %s550_s7 = scalar_lea.sflag [#allocation5], %s549_s11 }
 0x13a   : > { %907 = dma.done.wait (!%p728_p13), %s550_s7, 128  }
 0x13b   : > { %909 = vsyncadd (!%p728_p13), %s550_s7, 4294967168  ;;  %s23_s26 = sadd.s32 1, %s932_s26   ;;  %s1217_s21 = smov %s916_s22 }
 0x13c   : > { %p20_p4 = scmp.ge.s32.totalorder %s23_s26, 4   ;;  %s1218_s22 = smov %s920_s23 }
 0x13d   : > { %s1219_s23 = smov %s1031_s10  ;;  %s1220_s24 = smov %s928_s25 }
 0x13e   : > { %s1221_s25 = smov %s1223_s29  ;;  %22 = sbr.rel (!%p20_p4) target bundleno = 8 (0x8), region = 103 }
 0x145   :  { %564 = vsyncpa [#allocation3], 1 }
 0x146   :  { %566 = vsyncpa [#allocation3 + $0x1], 1 }
 0x147   :  { %567 = vsyncpa [#allocation5], 1 }
 0x148   :  { %569 = vsyncpa [#allocation5 + $0x1], 1 }

</bundles_post_ra>
